<compile_context>
chip_gen: v7x
topology: tpu7x:2x2x1
jax: 0.10.0
libtpu: 0.0.40
codegen_flags: <defaults>
</compile_context>

<pallas_src>
import jax
import jax.numpy as jnp
from jax import lax
from jax.experimental import pallas as pl
from jax.experimental.pallas import tpu as pltpu


def _gelu_tanh(a):
    # Matches the CUDA kernel's approximate GELU exactly.
    c = 0.044715
    sqrt_2_over_pi = 0.7978845608
    return a * 0.5 * (1.0 + jnp.tanh(sqrt_2_over_pi * (a + c * a * a * a)))


def _round_up(x, m):
    return (x + m - 1) // m * m


def make_fused_kernel(tile_n: int, l_out: int, scale_factor: float):
    def fused_kernel(x_ref, w_ref, b_ref, o_ref, max_sc):
        j = pl.program_id(1)

        @pl.when(j == 0)
        def _():
            max_sc[...] = jnp.full_like(max_sc, -jnp.inf)

        # (TB, in) @ (in, TN) on the MXU, f32 accumulation (operands may be bf16).
        y = jnp.dot(x_ref[...], w_ref[...], preferred_element_type=jnp.float32)
        y = y + b_ref[...]                                   # (1, TN) pooled bias

        g = _gelu_tanh(y) * scale_factor

        # Mask columns that are padding of the pooled-feature axis.
        col = j * tile_n + lax.broadcasted_iota(jnp.int32, g.shape, 1)
        g = jnp.where(col < l_out, g, -jnp.inf)

        max_sc[...] = jnp.maximum(max_sc[...], jnp.max(g, axis=-1, keepdims=True))

        @pl.when(j == pl.num_programs(1) - 1)
        def _():
            o_ref[...] = max_sc[...]

    return fused_kernel


def fused_forward(x, weight_t, bias, kernel_size, scale_factor, use_bf16=True):
    """x: [B, in_features] f32, weight_t: [in_features, out_features] f32,
    bias: [out_features] f32.  Returns [B] f32."""
    B, in_f = x.shape
    out_f = weight_t.shape[1]
    assert out_f % kernel_size == 0
    l_out = out_f // kernel_size

    # --- Fold the average pool into the affine map (exact). ---
    w_pooled = weight_t.reshape(in_f, l_out, kernel_size).mean(axis=-1)   # [in, L_out]
    b_pooled = bias.reshape(l_out, kernel_size).mean(axis=-1)             # [L_out]

    # --- Tile sizes (128-aligned, VMEM-safe on v5e/v6e/v7x). ---
    tile_b = min(_round_up(B, 8), 128)
    b_pad = _round_up(B, tile_b)
    tile_n = min(_round_up(l_out, 128), 512)
    n_pad = _round_up(l_out, tile_n)

    mm_dtype = jnp.bfloat16 if use_bf16 else jnp.float32

    x_p = jnp.pad(x, ((0, b_pad - B), (0, 0))).astype(mm_dtype)
    w_p = jnp.pad(w_pooled, ((0, 0), (0, n_pad - l_out))).astype(mm_dtype)
    b_p = jnp.pad(b_pooled, ((0, n_pad - l_out),)).reshape(1, n_pad).astype(jnp.float32)

    grid = (b_pad // tile_b, n_pad // tile_n)

    itemsize = 2 if use_bf16 else 4
    est = 2 * (tile_b * in_f * itemsize + in_f * tile_n * itemsize
               + tile_n * 4 + tile_b * 128 * 4) + tile_b * 128 * 4
    vmem_limit = int(min(max(2 * est, 16 * 1024 * 1024), 64 * 1024 * 1024))

    out = pl.pallas_call(
        make_fused_kernel(tile_n, l_out, float(scale_factor)),
        out_shape=jax.ShapeDtypeStruct((b_pad, 1), jnp.float32),
        grid_spec=pltpu.PrefetchScalarGridSpec(
            num_scalar_prefetch=0,
            grid=grid,
            in_specs=[
                pl.BlockSpec((tile_b, in_f), lambda i, j: (i, 0)),
                pl.BlockSpec((in_f, tile_n), lambda i, j: (0, j)),
                pl.BlockSpec((1, tile_n), lambda i, j: (0, j)),
            ],
            out_specs=pl.BlockSpec((tile_b, 1), lambda i, j: (i, 0)),
            scratch_shapes=[pltpu.VMEM((tile_b, 1), jnp.float32)],
        ),
        compiler_params=pltpu.CompilerParams(
            dimension_semantics=("parallel", "arbitrary"),
            vmem_limit_bytes=vmem_limit,
        ),
    )(x_p, w_p, b_p)

    return out[:B, 0]  # [B]


def reference_forward(x, weight_t, bias, kernel_size, scale_factor):
    y = x @ weight_t + bias
    B, F = y.shape
    avg = y.reshape(B, F // kernel_size, kernel_size).mean(-1)
    scaled = _gelu_tanh(avg) * scale_factor
    return scaled.max(-1)


if __name__ == "__main__":
    # Small, module-consistent shapes.
    B = 8
    in_features = 32
    out_features = 128
    pool_kernel_size = 4
    scale_factor = 2.0

    key = jax.random.PRNGKey(0)
    kx, kw, kb = jax.random.split(key, 3)

    x = jax.random.normal(kx, (B, in_features), dtype=jnp.float32)

    # Deterministic Linear params (PyTorch-style uniform init bounds).
    bound = 1.0 / (in_features ** 0.5)
    weight = jax.random.uniform(kw, (out_features, in_features),
                                minval=-bound, maxval=bound, dtype=jnp.float32)
    bias = jax.random.uniform(kb, (out_features,),
                              minval=-bound, maxval=bound, dtype=jnp.float32)
    weight_t = weight.T  # [in_features, out_features]

    out = fused_forward(x, weight_t, bias, pool_kernel_size, scale_factor)
    out = jax.block_until_ready(out)

    ref = reference_forward(x, weight_t, bias, pool_kernel_size, scale_factor)
    assert out.shape == (B,)
    # bf16 matmul operands (f32 accumulate): loosen tolerance accordingly.
    assert jnp.allclose(out, ref, atol=2e-2, rtol=2e-2), (out, ref)

    print("KERNEL_OK")
</pallas_src>

<mosaic_0001>
module attributes {stable_mosaic.version = 11 : i64} {
  func.func @fused_kernel(%arg0: i32, %arg1: i32, %arg2: memref<8x32xbf16, #tpu.memory_space<vmem>>, %arg3: memref<32x128xbf16, #tpu.memory_space<vmem>>, %arg4: memref<1x128xf32, #tpu.memory_space<vmem>>, %arg5: memref<8x1xf32, #tpu.memory_space<vmem>>, %arg6: memref<8x1xf32, #tpu.memory_space<vmem>>) attributes {dimension_semantics = [#tpu.dimension_semantics<parallel>, #tpu.dimension_semantics<arbitrary>], iteration_bounds = array<i64: 1, 1>, scalar_prefetch = 0 : i64, scratch_operands = 1 : i64, tpu.core_type = #tpu.core_type<tc>, window_params = [{transform_indices = @transform_0, window_bounds = array<i64: 8, 32>}, {transform_indices = @transform_1, window_bounds = array<i64: 32, 128>}, {transform_indices = @transform_2, window_bounds = array<i64: 1, 128>}, {transform_indices = @transform_3, window_bounds = array<i64: 8, 1>}]} {
    %c0_i32 = arith.constant 0 : i32
    %0 = arith.cmpi eq, %arg1, %c0_i32 : i32
    %1 = arith.extui %0 : i1 to i32
    %c0_i32_0 = arith.constant 0 : i32
    %2 = arith.cmpi ne, %1, %c0_i32_0 : i32
    scf.if %2 {
      %cst_19 = arith.constant 0xFF800000 : f32
      %40 = vector.broadcast %cst_19 : f32 to vector<8x1xf32>
      %c0_20 = arith.constant 0 : index
      %c0_21 = arith.constant 0 : index
      %41 = vector.load %arg6[%c0_20, %c0_21] : memref<8x1xf32, #tpu.memory_space<vmem>>, vector<8x1xf32>
      tpu.vector_store %arg6[%c0_20, %c0_21], %40 {strides = array<i32>} : memref<8x1xf32, #tpu.memory_space<vmem>>, vector<8x1xf32>,
    } else {
    }
    %c0 = arith.constant 0 : index
    %c0_1 = arith.constant 0 : index
    %3 = vector.load %arg2[%c0, %c0_1] : memref<8x32xbf16, #tpu.memory_space<vmem>>, vector<8x32xbf16>
    %c0_2 = arith.constant 0 : index
    %c0_3 = arith.constant 0 : index
    %4 = vector.load %arg3[%c0_2, %c0_3] : memref<32x128xbf16, #tpu.memory_space<vmem>>, vector<32x128xbf16>
    %cst = arith.constant dense<0.000000e+00> : vector<8x128xf32>
    %5 = tpu.matmul %3, %4, %cst {dimension_numbers = #tpu.dot_dimension_numbers<[1], [0], [0], [1], [0, 0, 1, 1], [], []>} : vector<8x32xbf16>, vector<32x128xbf16>, vector<8x128xf32> -> vector<8x128xf32>
    %c0_4 = arith.constant 0 : index
    %c0_5 = arith.constant 0 : index
    %6 = vector.load %arg4[%c0_4, %c0_5] : memref<1x128xf32, #tpu.memory_space<vmem>>, vector<1x128xf32>
    %7 = vector.broadcast %6 : vector<1x128xf32> to vector<8x128xf32>
    %8 = arith.addf %5, %7 : vector<8x128xf32>
    %cst_6 = arith.constant 5.000000e-01 : f32
    %9 = vector.broadcast %cst_6 : f32 to vector<8x128xf32>
    %10 = arith.mulf %8, %9 : vector<8x128xf32>
    %cst_7 = arith.constant 4.471500e-02 : f32
    %11 = vector.broadcast %cst_7 : f32 to vector<8x128xf32>
    %12 = arith.mulf %11, %8 : vector<8x128xf32>
    %13 = arith.mulf %12, %8 : vector<8x128xf32>
    %14 = arith.mulf %13, %8 : vector<8x128xf32>
    %15 = arith.addf %8, %14 : vector<8x128xf32>
    %cst_8 = arith.constant 0.797884583 : f32
    %16 = vector.broadcast %cst_8 : f32 to vector<8x128xf32>
    %17 = arith.mulf %16, %15 : vector<8x128xf32>
    %18 = math.tanh %17 : vector<8x128xf32>
    %cst_9 = arith.constant 1.000000e+00 : f32
    %19 = vector.broadcast %cst_9 : f32 to vector<8x128xf32>
    %20 = arith.addf %19, %18 : vector<8x128xf32>
    %21 = arith.mulf %10, %20 : vector<8x128xf32>
    %cst_10 = arith.constant 2.000000e+00 : f32
    %22 = vector.broadcast %cst_10 : f32 to vector<8x128xf32>
    %23 = arith.mulf %21, %22 : vector<8x128xf32>
    %c128_i32 = arith.constant 128 : i32
    %24 = arith.muli %arg1, %c128_i32 : i32
    %25 = tpu.iota {dimensions = array<i32: 1>} : vector<8x128xi32>
    %26 = vector.broadcast %24 : i32 to vector<8x128xi32>
    %27 = arith.addi %26, %25 : vector<8x128xi32>
    %c32_i32 = arith.constant 32 : i32
    %28 = vector.broadcast %c32_i32 : i32 to vector<8x128xi32>
    %29 = arith.cmpi slt, %27, %28 : vector<8x128xi32>
    %cst_11 = arith.constant 0xFF800000 : f32
    %30 = vector.broadcast %cst_11 : f32 to vector<8x128xf32>
    %31 = arith.select %29, %23, %30 : vector<8x128xi1>, vector<8x128xf32>
    %c0_12 = arith.constant 0 : index
    %c0_13 = arith.constant 0 : index
    %32 = vector.load %arg6[%c0_12, %c0_13] : memref<8x1xf32, #tpu.memory_space<vmem>>, vector<8x1xf32>
    %cst_14 = arith.constant dense<0xFF800000> : vector<8xf32>
    %33 = vector.multi_reduction <maximumf>, %31, %cst_14 [1] : vector<8x128xf32> to vector<8xf32>
    %34 = vector.shape_cast %33 : vector<8xf32> to vector<8x1xf32>
    %35 = arith.maximumf %32, %34 : vector<8x1xf32>
    %c0_15 = arith.constant 0 : index
    %c0_16 = arith.constant 0 : index
    %36 = vector.load %arg6[%c0_15, %c0_16] : memref<8x1xf32, #tpu.memory_space<vmem>>, vector<8x1xf32>
    tpu.vector_store %arg6[%c0_15, %c0_16], %35 {strides = array<i32>} : memref<8x1xf32, #tpu.memory_space<vmem>>, vector<8x1xf32>,
    %c0_i32_17 = arith.constant 0 : i32
    %37 = arith.cmpi eq, %arg1, %c0_i32_17 : i32
    %38 = arith.extui %37 : i1 to i32
    %c0_i32_18 = arith.constant 0 : i32
    %39 = arith.cmpi ne, %38, %c0_i32_18 : i32
    scf.if %39 {
      %c0_19 = arith.constant 0 : index
      %c0_20 = arith.constant 0 : index
      %40 = vector.load %arg6[%c0_19, %c0_20] : memref<8x1xf32, #tpu.memory_space<vmem>>, vector<8x1xf32>
      %c0_21 = arith.constant 0 : index
      %c0_22 = arith.constant 0 : index
      %41 = vector.load %arg5[%c0_21, %c0_22] : memref<8x1xf32, #tpu.memory_space<vmem>>, vector<8x1xf32>
      tpu.vector_store %arg5[%c0_21, %c0_22], %40 {strides = array<i32>} : memref<8x1xf32, #tpu.memory_space<vmem>>, vector<8x1xf32>,
    } else {
    }
    return
  }
  func.func @transform_0(%arg0: i32, %arg1: i32) -> (i32, i32) {
    %c0_i32 = arith.constant 0 : i32
    %c0_i32_0 = arith.constant 0 : i32
    return %arg0, %c0_i32 : i32, i32
  }
  func.func @transform_1(%arg0: i32, %arg1: i32) -> (i32, i32) {
    %c0_i32 = arith.constant 0 : i32
    %c0_i32_0 = arith.constant 0 : i32
    return %c0_i32, %arg1 : i32, i32
  }
  func.func @transform_2(%arg0: i32, %arg1: i32) -> (i32, i32) {
    %c0_i32 = arith.constant 0 : i32
    %c0_i32_0 = arith.constant 0 : i32
    return %c0_i32, %arg1 : i32, i32
  }
  func.func @transform_3(%arg0: i32, %arg1: i32) -> (i32, i32) {
    %c0_i32 = arith.constant 0 : i32
    %c0_i32_0 = arith.constant 0 : i32
    return %arg0, %c0_i32 : i32, i32
  }
}

</mosaic_0001>

<bundles_post_ra>
// kernel: tpu_custom_call.1
= control target key start
LH: loop header
LB: loop body
LE: loop exit
PB: predicated region body
PF: predicated region fallthrough
CT: control target
= control target key end

     0   :  { %8 = vsyncpa [#allocation4], 0  ;;  %s290_s0 = inlined_call_operand.hbm [shape: bf16[8,32], index: 0, kind: input, shape index: {}]   ;;  %s291_s1 = inlined_call_operand.hbm [shape: bf16[32,128], index: 1, kind: input, shape index: {}]   ;;  %s292_s2 = inlined_call_operand.vmem [shape: f32[1,128], index: 2, kind: input, shape index: {}]   ;;  %s293_s3 = inlined_call_operand.vmem [shape: f32[8,1], index: 3, kind: output, shape index: {}]  }
   0x1   :  { %9 = vsyncpa [#allocation6], 0  ;;  %s223_s12 = smov [#allocation3]   ;;  %s224_s14 = smov [#allocation5]  }
   0x2   :  { %s16_s13 = sshll.u32 %s223_s12, 4  ;;  %s25_s15 = sshll.u32 %s224_s14, 4  ;;  %s17_s13 = int_to_ptr.vmem [resolvable:$true] %s16_s13  ;;  %s250_s15 = int_to_ptr.vmem [resolvable:$true] %s25_s15 }
   0x3   :  { %s175_s18 = scalar_lea.hbm %s290_s0, 64 }
   0x4   :  { %p176_p0 = scmp.ne.s32.totalorder %s290_s0, %s175_s18  ;;  %p179_p1 = scmp.lt.u32.totalorder %s175_s18, %s290_s0 }
   0x6   :  { %p181_p2 = pnand %p179_p1, %p176_p0 }
   0x8   :  { %184 = shalt.err (!%p181_p2)
}
   0x9   :  { %s185_s23 = scalar_lea.vmem %s17_s13, 64  ;;  %p190_p4 = scmp.lt.s32.totalorder %s17_s13, %s17_s13 }
   0xa   :  { %p186_p3 = scmp.ne.s32.totalorder %s17_s13, %s185_s23  ;;  %p191_p5 = scmp.lt.s32.totalorder %s185_s23, %s185_s23 }
   0xc   :  { %p192_p6 = por %p191_p5, %p190_p4 }
   0xe   :  { %p193_p7 = pnand %p192_p6, %p186_p3 }
  0x10   :  { %196 = shalt.err (!%p193_p7)
}
  0x11   :  { %19 = dma.hbm_to_vmem [thread:$0]  %s290_s0, 64, %s17_s13, [#allocation4]  }
  0x12   :  { %s197_s28 = scalar_lea.hbm %s291_s1, 256 }
  0x13   :  { %p198_p8 = scmp.ne.s32.totalorder %s291_s1, %s197_s28  ;;  %p201_p9 = scmp.lt.u32.totalorder %s197_s28, %s291_s1 }
  0x15   :  { %p203_p10 = pnand %p201_p9, %p198_p8 }
  0x17   :  { %206 = shalt.err (!%p203_p10)
}
  0x18   :  { %s207_s6 = scalar_lea.vmem %s250_s15, 256  ;;  %p212_p12 = scmp.lt.s32.totalorder %s250_s15, %s250_s15 }
  0x19   :  { %p208_p11 = scmp.ne.s32.totalorder %s250_s15, %s207_s6  ;;  %p213_p13 = scmp.lt.s32.totalorder %s207_s6, %s207_s6 }
  0x1b   :  { %p214_p0 = por %p213_p13, %p212_p12 }
  0x1d   :  { %p215_p1 = pnand %p214_p0, %p208_p11 }
  0x1f   :  { %218 = shalt.err (!%p215_p1)
}
  0x20   :  { %s225_s0 = smov 64   ;;  %s226_s7 = smov 4  }
  0x21   :  { %31 = dma.hbm_to_vmem [thread:$0]  %s291_s1, 256, %s250_s15, [#allocation6], %s225_s0, %s225_s0, %s226_s7  }
  0x22   :  { %219 = dma.done.wait [#allocation4], 64  }
  0x23   :  { %220 = vsyncadd [#allocation4], 4294967232 }
  0x24   :  { %221 = dma.done.wait [#allocation6], 256  }
  0x25   :  { %222 = vsyncadd [#allocation6], 4294967040  ;;  %v227_v0 = vmov 0.0   ;;  %vm228_vm0 = vmmov 0   ;;  %v171_v1 = vld [vmem:[#allocation5] sm:$0xff]   ;;  %v172_v2 = vld [vmem:[#allocation5 + $0x8] sm:$0xff]   ;;  %v126_v16 = vlaneseq }
  0x26   :  { %156 = vmatprep.subr.bf16.mxu0 %v227_v0  ;;  %160 = vmatprep.mubr.msk.bf16.mxu0 %vm228_vm0, %v227_v0  ;;  %v47_v3 = vld [vmem:[#allocation3] sm:$0xf]  ;;  %vm71_vm1 = vcmask 261120   ;;  %vm45_vm2 = vcmask 7168   ;;  %v229_v4 = vmov -inf  }
  0x27   :  { %157 = vmatpush3.bf16.msra.mxu0 %v171_v1  ;;  %46 = vst.msk [vmem:[#allocation2] sm:$0xff] %vm45_vm2, %v229_v4  ;;  %v149_v5 = vld [vmem:[%s292_s2] ss:$0 sm:$0xff]  ;;  %v127_v18 = vand.u32 127, %v126_v16 }
  0x28   :  { %158 = vmatprep.subr.bf16.mxu0 %v227_v0 }
  0x29   :  { %vm130_vm3 = vcmp.lt.s32.totalorder %v127_v18, 32 }
  0x2b   :  { %159 = vmatpush3.bf16.msra.mxu0 %v172_v2 }
  0x2e   :  { %161 = vmatmul.mubr.msk.bf16.vlgmr.msra.gmra.mrb[0].mxu0 %vm71_vm1, %v47_v3  ;;  %v132_v24 = vld [vmem:[#allocation2] sm:$0xff] }
 0x101   :  { %v109_v6 = vpop.f32.mrb[0].mxu0 }
 0x102   :  { %v110_v7 = vadd.f32 %v149_v5, %v109_v6  ;;  %v162_v8 = vpop.f32.mrb[1].mxu0 }
 0x103   :  { %v112_v9 = vpop.f32.mrb[2].mxu0 }
 0x104   :  { %v116_v10 = vmul.f32 0.044715, %v110_v7  ;;  %v163_v11 = vpop.f32.mrb[3].mxu0  ;;  %v115_v19 = vmul.f32 0.5, %v110_v7 }
 0x106   :  { %v117_v12 = vmul.f32 %v116_v10, %v110_v7 }
 0x108   :  { %v118_v13 = vmul.f32 %v117_v12, %v110_v7 }
 0x10a   :  { %v119_v14 = vadd.f32 %v118_v13, %v110_v7 }
 0x10c   :  { %v120_v15 = vmul.f32 0.7978846, %v119_v14 }
 0x10e   :  { %173 = vtanh.f32 %v120_v15 }
 0x118   :  { %v174_v17 = vpop.eup %173 }
 0x119   :  { %v122_v20 = vadd.f32 1.0, %v174_v17 }
 0x11b   :  { %v123_v21 = vmul.f32 %v122_v20, %v115_v19 }
 0x11d   :  { %v124_v22 = vmul.f32 2.0, %v123_v21 }
 0x11f   :  { %v131_v23 = vsel %vm130_vm3, %v124_v22, -inf }
 0x120   :  { %133 = vmax.xlane.f32.xlu0 %v131_v23 }
 0x1ad   :  { %v134_v25 = vpop.xlane.xlu0 %133 }
 0x1ae   :  { %v135_v26 = vmax.f32 %v132_v24, %v134_v25 }
 0x1b0   :  { %137 = vst.msk [vmem:[#allocation2] sm:$0xff] %vm45_vm2, %v135_v26 }
 0x1b7   :  { %v141_v27 = vld [vmem:[#allocation2] sm:$0xff] }
 0x1b8   :  { %142 = vst.msk [vmem:[%s293_s3] sm:$0xff] %vm45_vm2, %v141_v27 }
 0x1b9   :  { %147 = vsyncpa [#allocation4], 1 }
 0x1ba   :  { %148 = vsyncpa [#allocation6], 1 }

</bundles_post_ra>
